<compile_context>
chip_gen: v7x
topology: tpu7x:2x2x1
jax: 0.10.0
libtpu: 0.0.40
codegen_flags: <defaults>
</compile_context>

<pallas_src>
import jax
import jax.numpy as jnp
from jax.experimental import pallas as pl
from jax.experimental.pallas import tpu as pltpu


def _round_up(x, m):
    return ((x + m - 1) // m) * m


def _sigmoid(x):
    return 1.0 / (1.0 + jnp.exp(-x))


# ------------------------------------------------------------------
# Fused linear (x @ w + b): bf16 MXU operands, f32 accumulate, lane-padded
# K and N, M-tiled "parallel" grid.
# ------------------------------------------------------------------
def _linear_bias_kernel(x_ref, w_ref, b_ref, o_ref):
    y = jnp.dot(x_ref[...], w_ref[...], preferred_element_type=jnp.float32)
    o_ref[...] = (y + b_ref[...]).astype(o_ref.dtype)


def pallas_linear(x, w, b=None, out_dtype=jnp.float32, tm_max=512):
    """y = x @ w (+ b).  x: (M, K), w: (K, N), b: (N,) or None."""
    M, K = x.shape
    Kw, N = w.shape
    assert K == Kw
    Kp, Np = _round_up(K, 128), _round_up(N, 128)
    if Kp != K:
        x = jnp.pad(x, ((0, 0), (0, Kp - K)))
        w = jnp.pad(w, ((0, Kp - K), (0, 0)))
    if Np != N:
        w = jnp.pad(w, ((0, 0), (0, Np - N)))
        if b is not None:
            b = jnp.pad(b, (0, Np - N))
    if b is None:
        b = jnp.zeros((Np,), jnp.float32)
    b2 = b.reshape(1, Np).astype(jnp.float32)

    TM = min(tm_max, _round_up(M, 8))
    Mp = _round_up(M, TM)
    if Mp != M:
        x = jnp.pad(x, ((0, Mp - M), (0, 0)))

    out = pl.pallas_call(
        _linear_bias_kernel,
        out_shape=jax.ShapeDtypeStruct((Mp, Np), out_dtype),
        grid=(Mp // TM,),
        in_specs=[
            pl.BlockSpec((TM, Kp), lambda i: (i, 0)),
            pl.BlockSpec((Kp, Np), lambda i: (0, 0)),
            pl.BlockSpec((1, Np), lambda i: (0, 0)),
        ],
        out_specs=pl.BlockSpec((TM, Np), lambda i: (i, 0)),
        compiler_params=pltpu.CompilerParams(
            dimension_semantics=("parallel",)),
    )(x.astype(jnp.bfloat16), w.astype(jnp.bfloat16), b2)
    return out[:M, :N]


# ------------------------------------------------------------------
# Recurrent attention + LSTMCell step kernel (whole recurrence in one call).
# ------------------------------------------------------------------
def _make_step_kernel(Hp):
    def kernel(bH_ref, proj_ref, wh2h_ref, bh2h_ref, wscore_ref,
               wcat_ref, bias_ref, emb_ref, out_ref, h_sc, c_sc):
        step = pl.program_id(1)

        @pl.when(step == 0)
        def _():
            h_sc[...] = jnp.zeros_like(h_sc)
            c_sc[...] = jnp.zeros_like(c_sc)

        h = h_sc[...]                                        # (TB, Hp) f32
        c = c_sc[...]
        h_bf = h.astype(jnp.bfloat16)

        # ---- attention over the encoder sequence (bf16 MXU, f32 math) ----
        hp = jnp.dot(h_bf, wh2h_ref[...],
                     preferred_element_type=jnp.float32) + bh2h_ref[...]  # (TB, Hp)
        t = jnp.tanh(proj_ref[...].astype(jnp.float32) + hp[:, None, :])  # (TB,T,Hp)
        e = jnp.sum(t * wscore_ref[...][None, :, :], axis=-1)             # (TB, T)
        e = e - jnp.max(e, axis=1, keepdims=True)
        p = jnp.exp(e)
        alpha = p * pl.reciprocal(jnp.sum(p, axis=1, keepdims=True),
                                  approx=True)                            # softmax
        # Context reduction stays on VPU/XLU: per-batch M=1 MXU matmuls would
        # waste the array; padded D columns of batch_H are zero.
        context = jnp.sum(alpha[:, :, None] * bH_ref[...].astype(jnp.float32),
                          axis=1)                                         # (TB, Dp)

        # ---- LSTMCell on [context, one_hot(char)] ----
        # Single fused gate matmul: W_cat = [W_ih[:, :D]^T ; W_hh^T];
        # the one-hot part (emb) was precomputed as a row gather of W_ih[:, D:]^T.
        x_cat = jnp.concatenate(
            [context.astype(jnp.bfloat16), h_bf], axis=-1)                # (TB, Dp+Hp)
        gates = (jnp.dot(x_cat, wcat_ref[...],
                         preferred_element_type=jnp.float32)
                 + bias_ref[...] + emb_ref[0].astype(jnp.float32))        # (TB, 4Hp)
        i_g = _sigmoid(gates[:, 0 * Hp:1 * Hp])
        f_g = _sigmoid(gates[:, 1 * Hp:2 * Hp])
        g_g = jnp.tanh(gates[:, 2 * Hp:3 * Hp])
        o_g = _sigmoid(gates[:, 3 * Hp:4 * Hp])
        c_new = f_g * c + i_g * g_g
        h_new = o_g * jnp.tanh(c_new)

        h_sc[...] = h_new
        c_sc[...] = c_new
        out_ref[0] = h_new.astype(out_ref.dtype)

    return kernel


# ------------------------------------------------------------------
# Forward pass (mirrors Attention.forward with is_train=True)
# ------------------------------------------------------------------
def attention_forward(batch_H, text, params, batch_max_length=25):
    """batch_H: (B, T, D) f32; text: (B, >= batch_max_length+1) int32.
    Returns probs: (B, num_steps, num_classes)."""
    B, T, D = batch_H.shape
    S = batch_max_length + 1
    H = params['hidden_size']
    C = params['num_classes']

    Hp = _round_up(H, 128)
    Dp = _round_up(D, 128)
    TB = min(_round_up(B, 8), 64)          # batch tile (sublane-aligned)
    Bp = _round_up(B, TB)
    nb = Bp // TB

    # ---- 1) step-invariant i2h projection (hoisted), bf16 MXU ----
    proj = pallas_linear(batch_H.reshape(B * T, D), params['i2h_w'].T,
                         out_dtype=jnp.bfloat16).reshape(B, T, H)
    proj_p = jnp.pad(proj, ((0, Bp - B), (0, 0), (0, Hp - H)))            # bf16
    bH_p = jnp.pad(batch_H, ((0, Bp - B), (0, 0), (0, Dp - D))
                   ).astype(jnp.bfloat16)

    # ---- 2) recurrence weights: each gate padded H->Hp so in-kernel gate
    #         slices are lane-aligned ----
    def gate_pad(m):                        # (..., 4H) -> (..., 4*Hp)
        lead = m.shape[:-1]
        m = m.reshape(lead + (4, H))
        m = jnp.pad(m, [(0, 0)] * len(lead) + [(0, 0), (0, Hp - H)])
        return m.reshape(lead + (4 * Hp,))

    w_ih = params['rnn_w_ih']                                             # (4H, D+C)
    wctx = jnp.pad(gate_pad(w_ih[:, :D].T), ((0, Dp - D), (0, 0)))        # (Dp, 4Hp)
    whh = jnp.pad(gate_pad(params['rnn_w_hh'].T), ((0, Hp - H), (0, 0)))  # (Hp, 4Hp)
    w_cat = jnp.concatenate([wctx, whh], axis=0).astype(jnp.bfloat16)     # (Dp+Hp,4Hp)
    bias = gate_pad((params['rnn_b_ih'] + params['rnn_b_hh']
                     ).reshape(1, 4 * H)).astype(jnp.float32)             # (1, 4Hp)

    # per-step char contribution: one_hot(text) @ W_ih[:, D:]^T == row gather
    w_emb = gate_pad(w_ih[:, D:].T)                                       # (C, 4Hp)
    emb = jnp.take(w_emb, text[:, :S], axis=0)                            # (B, S, 4Hp)
    emb = jnp.transpose(emb, (1, 0, 2))                                   # (S, B, 4Hp)
    emb = jnp.pad(emb, ((0, 0), (0, Bp - B), (0, 0))).astype(jnp.bfloat16)

    wh2h = jnp.pad(params['h2h_w'].T, ((0, Hp - H), (0, Hp - H))
                   ).astype(jnp.bfloat16)                                 # (Hp, Hp)
    bh2h = jnp.pad(params['h2h_b'], (0, Hp - H)).reshape(1, Hp).astype(jnp.float32)
    wscore = jnp.pad(params['score_w'], ((0, 0), (0, Hp - H))).astype(jnp.float32)

    def run_recurrence(single_buffer_weights):
        kw = ({'pipeline_mode': pl.Buffered(1)}
              if single_buffer_weights else {})
        in_specs = [
            pl.BlockSpec((TB, T, Dp), lambda b, s: (b, 0, 0)),            # batch_H
            pl.BlockSpec((TB, T, Hp), lambda b, s: (b, 0, 0)),            # i2h(batch_H)
            pl.BlockSpec((Hp, Hp), lambda b, s: (0, 0), **kw),            # W_h2h^T
            pl.BlockSpec((1, Hp), lambda b, s: (0, 0), **kw),             # b_h2h
            pl.BlockSpec((1, Hp), lambda b, s: (0, 0), **kw),             # score w
            pl.BlockSpec((Dp + Hp, 4 * Hp), lambda b, s: (0, 0), **kw),   # [Wctx;Whh]
            pl.BlockSpec((1, 4 * Hp), lambda b, s: (0, 0), **kw),         # b_ih+b_hh
            pl.BlockSpec((1, TB, 4 * Hp), lambda b, s: (s, b, 0)),        # per-step emb
        ]
        return pl.pallas_call(
            _make_step_kernel(Hp),
            out_shape=jax.ShapeDtypeStruct((S, Bp, Hp), jnp.bfloat16),
            grid=(nb, S),
            in_specs=in_specs,
            out_specs=pl.BlockSpec((1, TB, Hp), lambda b, s: (s, b, 0)),
            scratch_shapes=[pltpu.VMEM((TB, Hp), jnp.float32),            # h state
                            pltpu.VMEM((TB, Hp), jnp.float32)],           # c state
            compiler_params=pltpu.CompilerParams(
                dimension_semantics=("parallel", "arbitrary"),
                vmem_limit_bytes=48 * 1024 * 1024),
        )(bH_p, proj_p, wh2h, bh2h, wscore, w_cat, bias, emb)

    try:
        out_hidden = run_recurrence(True)
    except Exception:
        # pipeline_mode=pl.Buffered(1) unsupported on this jax version; fall
        # back to default double-buffering (identical results, more VMEM).
        out_hidden = run_recurrence(False)

    # ---- 3) generator over all step hiddens (C padded to 128 inside) ----
    gen_w = jnp.pad(params['gen_w'].T, ((0, Hp - H), (0, 0)))             # (Hp, C)
    probs = pallas_linear(out_hidden.reshape(S * Bp, Hp), gen_w,
                          b=params['gen_b'], out_dtype=jnp.float32)
    probs = probs.reshape(S, Bp, C).transpose(1, 0, 2)[:B]                # (B, S, C)
    return probs


# ------------------------------------------------------------------
# Pure-JAX reference (f32, mirrors the PyTorch graph) for a sanity check.
# ------------------------------------------------------------------
def _reference_forward(batch_H, text, params, batch_max_length):
    B, T, D = batch_H.shape
    H = params['hidden_size']
    C = params['num_classes']
    S = batch_max_length + 1
    h = jnp.zeros((B, H), jnp.float32)
    c = jnp.zeros((B, H), jnp.float32)
    proj = batch_H @ params['i2h_w'].T
    outs = []
    for i in range(S):
        onehot = jax.nn.one_hot(text[:, i], C, dtype=jnp.float32)
        hp = h @ params['h2h_w'].T + params['h2h_b']
        e = jnp.tanh(proj + hp[:, None, :]) @ params['score_w'].T        # (B,T,1)
        alpha = jax.nn.softmax(e, axis=1)
        context = jnp.sum(alpha * batch_H, axis=1)
        x = jnp.concatenate([context, onehot], axis=1)
        gates = (x @ params['rnn_w_ih'].T + params['rnn_b_ih']
                 + h @ params['rnn_w_hh'].T + params['rnn_b_hh'])
        i_g, f_g, g_g, o_g = jnp.split(gates, 4, axis=1)
        c = jax.nn.sigmoid(f_g) * c + jax.nn.sigmoid(i_g) * jnp.tanh(g_g)
        h = jax.nn.sigmoid(o_g) * jnp.tanh(c)
        outs.append(h)
    hs = jnp.stack(outs, axis=1)                                          # (B,S,H)
    return hs @ params['gen_w'].T + params['gen_b']


# ------------------------------------------------------------------
# Deterministic synthetic parameters (same shapes as the nn.Module)
# ------------------------------------------------------------------
def init_params(input_size, hidden_size, num_classes, key):
    ks = jax.random.split(key, 10)
    H, D, C = hidden_size, input_size, num_classes

    def rnd(k, shape, scale=0.1):
        return (scale * jax.random.normal(k, shape)).astype(jnp.float32)

    return dict(
        hidden_size=H, num_classes=C,
        i2h_w=rnd(ks[0], (H, D)),            # Linear(D, H, bias=False)
        h2h_w=rnd(ks[1], (H, H)),            # Linear(H, H)
        h2h_b=rnd(ks[2], (H,)),
        score_w=rnd(ks[3], (1, H)),          # Linear(H, 1, bias=False)
        rnn_w_ih=rnd(ks[4], (4 * H, D + C)), # LSTMCell(D + C, H)
        rnn_w_hh=rnd(ks[5], (4 * H, H)),
        rnn_b_ih=rnd(ks[6], (4 * H,)),
        rnn_b_hh=rnd(ks[7], (4 * H,)),
        gen_w=rnd(ks[8], (C, H)),            # Linear(H, C)
        gen_b=rnd(ks[9], (C,)),
    )


if __name__ == "__main__":
    key = jax.random.PRNGKey(0)
    k_h, k_t, k_p = jax.random.split(key, 3)

    # small shapes: batch=2, encoder steps=8, contextual channels=32,
    # hidden=32, num_classes=38, batch_max_length=7 -> num_steps=8
    B, T, D = 2, 8, 32
    H, C = 32, 38
    batch_max_length = 7

    batch_H = jax.random.normal(k_h, (B, T, D), dtype=jnp.float32)
    text = jax.random.randint(k_t, (B, batch_max_length + 1), 0, C,
                              dtype=jnp.int32)
    params = init_params(D, H, C, k_p)

    probs = attention_forward(batch_H, text, params,
                              batch_max_length=batch_max_length)
    probs = jax.block_until_ready(probs)

    assert probs.shape == (B, batch_max_length + 1, C), probs.shape
    assert bool(jnp.all(jnp.isfinite(probs)))

    ref = _reference_forward(batch_H, text, params, batch_max_length)
    max_err = float(jnp.max(jnp.abs(probs - ref)))
    assert max_err < 5e-2, f"max abs error vs reference: {max_err}"

    print("KERNEL_OK")
</pallas_src>

<mosaic_0001>
module attributes {stable_mosaic.version = 11 : i64} {
  func.func @_linear_bias_kernel(%arg0: i32, %arg1: memref<16x128xbf16, #tpu.memory_space<vmem>>, %arg2: memref<128x128xbf16, #tpu.memory_space<vmem>>, %arg3: memref<1x128xf32, #tpu.memory_space<vmem>>, %arg4: memref<16x128xbf16, #tpu.memory_space<vmem>>) attributes {dimension_semantics = [#tpu.dimension_semantics<parallel>], iteration_bounds = array<i64: 1>, scalar_prefetch = 0 : i64, scratch_operands = 0 : i64, tpu.core_type = #tpu.core_type<tc>, window_params = [{transform_indices = @transform_0, window_bounds = array<i64: 16, 128>}, {pipeline_mode = #tpu.pipeline_mode<synchronous>, transform_indices = @transform_1, window_bounds = array<i64: 128, 128>}, {pipeline_mode = #tpu.pipeline_mode<synchronous>, transform_indices = @transform_2, window_bounds = array<i64: 1, 128>}, {transform_indices = @transform_3, window_bounds = array<i64: 16, 128>}]} {
    %c0 = arith.constant 0 : index
    %c0_0 = arith.constant 0 : index
    %0 = vector.load %arg1[%c0, %c0_0] : memref<16x128xbf16, #tpu.memory_space<vmem>>, vector<16x128xbf16>
    %c0_1 = arith.constant 0 : index
    %c0_2 = arith.constant 0 : index
    %1 = vector.load %arg2[%c0_1, %c0_2] : memref<128x128xbf16, #tpu.memory_space<vmem>>, vector<128x128xbf16>
    %cst = arith.constant dense<0.000000e+00> : vector<16x128xf32>
    %2 = tpu.matmul %0, %1, %cst {dimension_numbers = #tpu.dot_dimension_numbers<[1], [0], [0], [1], [0, 0, 1, 1], [], []>} : vector<16x128xbf16>, vector<128x128xbf16>, vector<16x128xf32> -> vector<16x128xf32>
    %c0_3 = arith.constant 0 : index
    %c0_4 = arith.constant 0 : index
    %3 = vector.load %arg3[%c0_3, %c0_4] : memref<1x128xf32, #tpu.memory_space<vmem>>, vector<1x128xf32>
    %4 = vector.broadcast %3 : vector<1x128xf32> to vector<16x128xf32>
    %5 = arith.addf %2, %4 : vector<16x128xf32>
    %6 = arith.truncf %5 : vector<16x128xf32> to vector<16x128xbf16>
    %c0_5 = arith.constant 0 : index
    %c0_6 = arith.constant 0 : index
    %7 = vector.load %arg4[%c0_5, %c0_6] : memref<16x128xbf16, #tpu.memory_space<vmem>>, vector<16x128xbf16>
    tpu.vector_store %arg4[%c0_5, %c0_6], %6 {strides = array<i32>} : memref<16x128xbf16, #tpu.memory_space<vmem>>, vector<16x128xbf16>,
    return
  }
  func.func @transform_0(%arg0: i32) -> (i32, i32) {
    %c0_i32 = arith.constant 0 : i32
    %c0_i32_0 = arith.constant 0 : i32
    return %arg0, %c0_i32 : i32, i32
  }
  func.func @transform_1(%arg0: i32) -> (i32, i32) {
    %c0_i32 = arith.constant 0 : i32
    %c0_i32_0 = arith.constant 0 : i32
    %c0_i32_1 = arith.constant 0 : i32
    return %c0_i32, %c0_i32_0 : i32, i32
  }
  func.func @transform_2(%arg0: i32) -> (i32, i32) {
    %c0_i32 = arith.constant 0 : i32
    %c0_i32_0 = arith.constant 0 : i32
    %c0_i32_1 = arith.constant 0 : i32
    return %c0_i32, %c0_i32_0 : i32, i32
  }
  func.func @transform_3(%arg0: i32) -> (i32, i32) {
    %c0_i32 = arith.constant 0 : i32
    %c0_i32_0 = arith.constant 0 : i32
    return %arg0, %c0_i32 : i32, i32
  }
}

</mosaic_0001>

<bundles_post_ra>
// kernel: tpu_custom_call.1
= control target key start
LH: loop header
LB: loop body
LE: loop exit
PB: predicated region body
PF: predicated region fallthrough
CT: control target
= control target key end

     0   :  { %8 = vsyncpa [#allocation3], 0  ;;  %s403_s0 = inlined_call_operand.hbm [shape: bf16[16,128], index: 0, kind: input, shape index: {}]   ;;  %s404_s1 = inlined_call_operand.hbm [shape: bf16[128,128], index: 1, kind: input, shape index: {}]   ;;  %s405_s2 = inlined_call_operand.vmem [shape: f32[1,128], index: 2, kind: input, shape index: {}]   ;;  %s406_s3 = inlined_call_operand.hbm [shape: bf16[16,128], index: 3, kind: output, shape index: {}]  }
   0x1   :  { %9 = vsyncpa [#allocation6], 0 }
   0x2   :  { %10 = vsyncpa [#allocation4], 0  ;;  %s328_s12 = smov [#allocation2]   ;;  %s256_s16 = scalar_lea.hbm %s403_s0, 128 }
   0x3   :  { %s16_s13 = sshll.u32 %s328_s12, 4  ;;  %p257_p0 = scmp.ne.s32.totalorder %s403_s0, %s256_s16  ;;  %s17_s13 = int_to_ptr.vmem [resolvable:$true] %s16_s13 }
   0x4   :  { %p260_p1 = scmp.lt.u32.totalorder %s256_s16, %s403_s0 }
   0x6   :  { %p262_p2 = pnand %p260_p1, %p257_p0 }
   0x8   :  { %265 = shalt.err (!%p262_p2)
}
   0x9   :  { %s266_s21 = scalar_lea.vmem %s17_s13, 128  ;;  %p271_p4 = scmp.lt.s32.totalorder %s17_s13, %s17_s13 }
   0xa   :  { %p267_p3 = scmp.ne.s32.totalorder %s17_s13, %s266_s21  ;;  %p272_p5 = scmp.lt.s32.totalorder %s266_s21, %s266_s21 }
   0xc   :  { %p273_p6 = por %p272_p5, %p271_p4 }
   0xe   :  { %p274_p7 = pnand %p273_p6, %p267_p3 }
  0x10   :  { %277 = shalt.err (!%p274_p7)
}
  0x11   :  { %s329_s22 = smov 64   ;;  %s330_s23 = smov 4  }
  0x12   :  { %22 = dma.hbm_to_vmem [thread:$0]  %s403_s0, 128, %s17_s13, [#allocation3], %s329_s22, %s329_s22, %s330_s23  }
  0x13   :  { %s331_s26 = smov [#allocation5]   ;;  %s278_s30 = scalar_lea.hbm %s404_s1, 1024 }
  0x14   :  { %s28_s27 = sshll.u32 %s331_s26, 4  ;;  %p279_p8 = scmp.ne.s32.totalorder %s404_s1, %s278_s30  ;;  %s29_s27 = int_to_ptr.vmem [resolvable:$true] %s28_s27 }
  0x15   :  { %p282_p9 = scmp.lt.u32.totalorder %s278_s30, %s404_s1 }
  0x17   :  { %p284_p10 = pnand %p282_p9, %p279_p8 }
  0x19   :  { %287 = shalt.err (!%p284_p10)
}
  0x1a   :  { %s288_s8 = scalar_lea.vmem %s29_s27, 1024  ;;  %p293_p12 = scmp.lt.s32.totalorder %s29_s27, %s29_s27 }
  0x1b   :  { %p289_p11 = scmp.ne.s32.totalorder %s29_s27, %s288_s8  ;;  %p294_p13 = scmp.lt.s32.totalorder %s288_s8, %s288_s8 }
  0x1d   :  { %p295_p0 = por %p294_p13, %p293_p12 }
  0x1f   :  { %p296_p1 = pnand %p295_p0, %p289_p11 }
  0x21   :  { %299 = shalt.err (!%p296_p1)
}
  0x22   :  { %34 = dma.hbm_to_vmem [thread:$0]  %s404_s1, 1024, %s29_s27, [#allocation6], %s329_s22, %s329_s22, %s330_s23  }
  0x23   :  { %322 = dma.done.wait [#allocation3], 128  }
  0x24   :  { %323 = vsyncadd [#allocation3], 4294967168 }
  0x25   :  { %324 = dma.done.wait [#allocation6], 1024  }
  0x26   :  { %325 = vsyncadd [#allocation6], 4294966272  ;;  %v332_v0 = vmov 0.0   ;;  %vm333_vm0 = vmmov 0   ;;  %v247_v1 = vld [vmem:[#allocation5] sm:$0xff]   ;;  %v248_v2 = vld [vmem:[#allocation5 + $0x8] sm:$0xff]  }
  0x27   :  { %220 = vmatprep.subr.bf16.mxu0 %v332_v0  ;;  %236 = vmatprep.mubr.msk.bf16.mxu0 %vm333_vm0, %v332_v0  ;;  %v249_v3 = vld [vmem:[#allocation5 + $0x10] sm:$0xff]   ;;  %v250_v4 = vld [vmem:[#allocation5 + $0x18] sm:$0xff]   ;;  %v251_v5 = vld [vmem:[#allocation5 + $0x20] sm:$0xff]   ;;  %s334_s11 = smov [#allocation7]  }
  0x28   :  { %221 = vmatpush3.bf16.msra.mxu0 %v247_v1  ;;  %v252_v6 = vld [vmem:[#allocation5 + $0x28] sm:$0xff]   ;;  %v253_v7 = vld [vmem:[#allocation5 + $0x30] sm:$0xff]   ;;  %v254_v8 = vld [vmem:[#allocation5 + $0x38] sm:$0xff]   ;;  %s179_s12 = sshll.u32 %s334_s11, 4  ;;  %s180_s12 = int_to_ptr.vmem [resolvable:$true] %s179_s12 }
  0x29   :  { %222 = vmatprep.subr.bf16.mxu0 %v332_v0  ;;  %v255_v9 = vld [vmem:[#allocation2] sm:$0xff]   ;;  %s300_s13 = scalar_lea.vmem %s180_s12, 128  ;;  %p305_p3 = scmp.lt.s32.totalorder %s180_s12, %s180_s12 }
  0x2a   :  { %v192_v10 = vld [vmem:[%s405_s2] ss:$0 sm:$0xff]  ;;  %p301_p2 = scmp.ne.s32.totalorder %s180_s12, %s300_s13  ;;  %p306_p4 = scmp.lt.s32.totalorder %s300_s13, %s300_s13 }
  0x2c   :  { %223 = vmatpush3.bf16.msra.mxu0 %v248_v2  ;;  %p307_p5 = por %p306_p4, %p305_p3 }
  0x2d   :  { %224 = vmatprep.subr.bf16.mxu0 %v332_v0 }
  0x2e   :  { %p308_p6 = pnand %p307_p5, %p301_p2 }
  0x30   :  { %225 = vmatpush3.bf16.msra.mxu0 %v249_v3 }
  0x31   :  { %226 = vmatprep.subr.bf16.mxu0 %v332_v0 }
  0x34   :  { %227 = vmatpush3.bf16.msra.mxu0 %v250_v4 }
  0x35   :  { %228 = vmatprep.subr.bf16.mxu0 %v332_v0 }
  0x38   :  { %229 = vmatpush3.bf16.msra.mxu0 %v251_v5 }
  0x39   :  { %230 = vmatprep.subr.bf16.mxu0 %v332_v0 }
  0x3c   :  { %231 = vmatpush3.bf16.msra.mxu0 %v252_v6 }
  0x3d   :  { %232 = vmatprep.subr.bf16.mxu0 %v332_v0 }
  0x40   :  { %233 = vmatpush3.bf16.msra.mxu0 %v253_v7 }
  0x41   :  { %234 = vmatprep.subr.bf16.mxu0 %v332_v0 }
  0x44   :  { %235 = vmatpush3.bf16.msra.mxu0 %v254_v8 }
  0x47   :  { %237 = vmatmul.mubr.bf16.vlgmr.msra.gmra.mrb[0].mxu0 %v255_v9 }
 0x11a   :  { %v157_v11 = vpop.f32.mrb[0].mxu0 }
 0x11b   :  { %v238_v12 = vpop.f32.mrb[1].mxu0  ;;  %v158_v14 = vadd.f32 %v192_v10, %v157_v11 }
 0x11c   :  { %v160_v13 = vpop.f32.mrb[2].mxu0 }
 0x11d   :  { %v161_v15 = vadd.f32 %v192_v10, %v160_v13  ;;  %v239_v16 = vpop.f32.mrb[3].mxu0 }
 0x11f   :  { %v209_v17 = vpack.c.bf16 %v161_v15, %v158_v14 }
 0x121   :  { %210 = vst [vmem:[#allocation7] sm:$0xff] %v209_v17  }
 0x122   :  { %311 = shalt.err (!%p308_p6)
}
 0x123   :  { %s312_s15 = scalar_lea.hbm %s406_s3, 128 }
 0x124   :  { %p313_p7 = scmp.ne.s32.totalorder %s406_s3, %s312_s15  ;;  %p316_p8 = scmp.lt.u32.totalorder %s312_s15, %s406_s3 }
 0x126   :  { %p318_p9 = pnand %p316_p8, %p313_p7 }
 0x128   :  { %321 = shalt.err (!%p318_p9)
}
 0x129   :  { %185 = dma.vmem_to_hbm [thread:$0]  %s180_s12, 128, %s406_s3, [#allocation4], %s329_s22, %s329_s22, %s330_s23  }
 0x12a   :  { %326 = dma.done.wait [#allocation4], 128  }
 0x12b   :  { %327 = vsyncadd [#allocation4], 4294967168 }
 0x12c   :  { %189 = vsyncpa [#allocation3], 1 }
 0x12d   :  { %190 = vsyncpa [#allocation6], 1 }
 0x12e   :  { %191 = vsyncpa [#allocation4], 1 }

</bundles_post_ra>
